<compile_context>
chip_gen: v6e
topology: v6e:2x2x1
jax: 0.10.0
libtpu: 0.0.40
codegen_flags: <defaults>
</compile_context>

<pallas_src>
import functools

import jax
import jax.numpy as jnp
from jax.experimental import pallas as pl
from jax.experimental.pallas import tpu as pltpu

MLP_HIDDEN = 256


# ---------------------------------------------------------------------------
# Kernel
# ---------------------------------------------------------------------------
def _head_kernel(h_ref, w1_ref, b1_ref, w2_ref, b2_ref, o_ref, acc_ref, *, seq_len):
    s = pl.program_id(1)

    @pl.when(s == 0)
    def _init():
        acc_ref[...] = jnp.zeros_like(acc_ref)

    # Stream the (TB, TS, D) hidden-state tile (bf16 in HBM); accumulate the
    # pooled sum in an f32 scratch.  The per-tile reduce hides under the DMA.
    h = h_ref[...].astype(jnp.float32)            # [TB, TS, D]
    acc_ref[...] += jnp.sum(h, axis=1)            # [TB, D], f32 accumulate

    @pl.when(s == pl.num_programs(1) - 1)
    def _finalize():
        # Mean over the *real* (unpadded) sequence length.
        x = acc_ref[...] * jnp.float32(1.0 / seq_len)           # [TB, D]

        # Linear(D, 256) + ReLU  (MXU matmul, f32 accumulation).
        z1 = jnp.dot(x, w1_ref[...], preferred_element_type=jnp.float32) + b1_ref[...]
        a1 = jnp.maximum(z1, 0.0)                                # [TB, 256]

        # Linear(256, 1): w2 stored as a (1, 256) row -> VPU multiply + lane
        # reduce instead of a 1-column MXU matmul.
        z2 = jnp.sum(a1 * w2_ref[...], axis=-1, keepdims=True) + b2_ref[...]  # [TB, 1]
        y = jax.nn.sigmoid(z2)

        # Lane-dense store (value broadcast across 128 lanes); wrapper slices col 0.
        o_ref[...] = jnp.broadcast_to(y, o_ref.shape).astype(o_ref.dtype)


# ---------------------------------------------------------------------------
# Wrapper
# ---------------------------------------------------------------------------
def _round_up(x, m):
    return ((x + m - 1) // m) * m


def _choose_tiles(B, S, D, itemsize, budget_bytes=8 << 20):
    """Pick (TB, TS) so the double-buffered hidden block stays within budget."""
    TB = min(128, _round_up(B, 8))
    row_bytes = 2 * TB * D * itemsize             # double-buffered bytes / seq elem
    max_ts = max(8, (budget_bytes // row_bytes) // 8 * 8)
    if S <= max_ts:
        return TB, S                               # single sequence tile
    TS = max_ts
    for ts in range(max_ts, 7, -8):                # prefer a tile that divides S
        if S % ts == 0:
            TS = ts
            break
    return TB, TS


def mlp_head(hidden_states, w1, b1, w2, b2):
    """Fused mean-pool + MLP head.  hidden_states: [B, S, D] (bf16 or f32)."""
    B, S, D = hidden_states.shape
    H = MLP_HIDDEN
    assert w1.shape == (D, H)

    itemsize = jnp.dtype(hidden_states.dtype).itemsize
    TB, TS = _choose_tiles(B, S, D, itemsize)
    B_pad = _round_up(B, TB)
    S_pad = _round_up(S, TS)
    if (B_pad, S_pad) != (B, S):
        # Zero padding: padded seq rows add 0 to the sum (we divide by the real
        # S); padded batch rows are sliced off below.
        hidden_states = jnp.pad(
            hidden_states, ((0, B_pad - B), (0, S_pad - S), (0, 0)))

    nb = B_pad // TB
    ns = S_pad // TS

    b1 = b1.reshape(1, H).astype(jnp.float32)
    w2 = w2.reshape(1, H).astype(jnp.float32)
    b2 = b2.reshape(1, 1).astype(jnp.float32)

    # Explicit VMEM budget (fits comfortably within v7x's 32 MiB scoped default).
    vmem_need = (2 * TB * TS * D * itemsize        # double-buffered hidden tiles
                 + 2 * (D * H + 2 * H + 1) * 4     # resident weights / biases
                 + 2 * TB * 128 * 4                # output block
                 + TB * D * 4)                     # f32 accumulator scratch
    vmem_limit = int(min(max(2 * vmem_need, 16 << 20), 48 << 20))

    kernel = functools.partial(_head_kernel, seq_len=S)

    out = pl.pallas_call(
        kernel,
        out_shape=jax.ShapeDtypeStruct((B_pad, 128), jnp.float32),
        grid=(nb, ns),
        in_specs=[
            pl.BlockSpec((TB, TS, D), lambda b, s: (b, s, 0)),   # streamed
            pl.BlockSpec((D, H), lambda b, s: (0, 0)),           # resident
            pl.BlockSpec((1, H), lambda b, s: (0, 0)),           # resident
            pl.BlockSpec((1, H), lambda b, s: (0, 0)),           # resident
            pl.BlockSpec((1, 1), lambda b, s: (0, 0)),           # resident
        ],
        out_specs=pl.BlockSpec((TB, 128), lambda b, s: (b, 0)),
        scratch_shapes=[pltpu.VMEM((TB, D), jnp.float32)],
        compiler_params=pltpu.CompilerParams(
            dimension_semantics=("parallel", "arbitrary"),
            vmem_limit_bytes=vmem_limit,
        ),
    )(hidden_states, w1, b1, w2, b2)

    return out[:B, :1]


def ccre_bert_mlp_forward(input_ids, params):
    """Mirrors cCRE_BERT_MLP.forward (attention_mask / token_type_ids unused here)."""
    # TODO(synk): pretrained BERT encoder (AutoModel.from_pretrained) has no in-script
    # equivalent without a checkpoint; a deterministic bf16 token-embedding lookup
    # stands in for outputs[0] (last_hidden_state).
    hidden = params["embedding"][input_ids]          # [B, S, D] bf16 (halves HBM read)
    return mlp_head(hidden, params["w1"], params["b1"], params["w2"], params["b2"])


# ---------------------------------------------------------------------------
# Demo / self-check
# ---------------------------------------------------------------------------
if __name__ == "__main__":
    key = jax.random.PRNGKey(0)
    B, S, D = 2, 8, 32           # batch, seq, hidden_size (config.hidden_size stand-in)
    VOCAB = 30

    k_emb, k_ids, k_w1, k_b1, k_w2, k_b2 = jax.random.split(key, 6)

    input_ids = jax.random.randint(k_ids, (B, S), 0, VOCAB, dtype=jnp.int32)

    params = {
        "embedding": (jax.random.normal(k_emb, (VOCAB, D), dtype=jnp.float32)
                      * 0.02).astype(jnp.bfloat16),
        # stored [in, out] (transpose of torch nn.Linear weight)
        "w1": jax.random.normal(k_w1, (D, MLP_HIDDEN), dtype=jnp.float32) * 0.02,
        "b1": jax.random.normal(k_b1, (MLP_HIDDEN,), dtype=jnp.float32) * 0.02,
        # Linear(256, 1) weight stored as a flat (256,) row for the VPU projection.
        "w2": jax.random.normal(k_w2, (MLP_HIDDEN,), dtype=jnp.float32) * 0.02,
        "b2": jax.random.normal(k_b2, (1,), dtype=jnp.float32) * 0.02,
    }

    logits = ccre_bert_mlp_forward(input_ids, params)
    logits = jax.block_until_ready(logits)

    # Shape / range sanity.
    assert logits.shape == (B, 1)
    assert bool(jnp.all((logits > 0.0) & (logits < 1.0)))

    # Numerical check against a pure-JAX reference of the same math.
    h_ref = params["embedding"][input_ids].astype(jnp.float32)
    x_ref = jnp.mean(h_ref, axis=1)
    z1_ref = jnp.maximum(x_ref @ params["w1"] + params["b1"][None, :], 0.0)
    z2_ref = jnp.sum(z1_ref * params["w2"][None, :], axis=-1, keepdims=True) + params["b2"]
    ref = jax.nn.sigmoid(z2_ref)
    assert bool(jnp.allclose(logits, ref, atol=1e-3, rtol=1e-3))

    print("KERNEL_OK")
</pallas_src>

<mosaic_0001>
module attributes {stable_mosaic.version = 11 : i64} {
  func.func @_head_kernel(%arg0: i32, %arg1: i32, %arg2: memref<8x8x32xbf16, #tpu.memory_space<vmem>>, %arg3: memref<32x256xf32, #tpu.memory_space<vmem>>, %arg4: memref<1x256xf32, #tpu.memory_space<vmem>>, %arg5: memref<1x256xf32, #tpu.memory_space<vmem>>, %arg6: memref<1x1xf32, #tpu.memory_space<vmem>>, %arg7: memref<8x128xf32, #tpu.memory_space<vmem>>, %arg8: memref<8x32xf32, #tpu.memory_space<vmem>>) attributes {dimension_semantics = [#tpu.dimension_semantics<parallel>, #tpu.dimension_semantics<arbitrary>], iteration_bounds = array<i64: 1, 1>, scalar_prefetch = 0 : i64, scratch_operands = 1 : i64, tpu.core_type = #tpu.core_type<tc>, window_params = [{transform_indices = @transform_0, window_bounds = array<i64: 8, 8, 32>}, {pipeline_mode = #tpu.pipeline_mode<synchronous>, transform_indices = @transform_1, window_bounds = array<i64: 32, 256>}, {pipeline_mode = #tpu.pipeline_mode<synchronous>, transform_indices = @transform_2, window_bounds = array<i64: 1, 256>}, {pipeline_mode = #tpu.pipeline_mode<synchronous>, transform_indices = @transform_3, window_bounds = array<i64: 1, 256>}, {pipeline_mode = #tpu.pipeline_mode<synchronous>, transform_indices = @transform_4, window_bounds = array<i64: 1, 1>}, {transform_indices = @transform_5, window_bounds = array<i64: 8, 128>}]} {
    %c0_i32 = arith.constant 0 : i32
    %0 = arith.cmpi eq, %arg1, %c0_i32 : i32
    %1 = arith.extui %0 : i1 to i32
    %c0_i32_0 = arith.constant 0 : i32
    %2 = arith.cmpi ne, %1, %c0_i32_0 : i32
    scf.if %2 {
      %cst_9 = arith.constant 0.000000e+00 : f32
      %12 = vector.broadcast %cst_9 : f32 to vector<8x32xf32>
      %c0_10 = arith.constant 0 : index
      %c0_11 = arith.constant 0 : index
      %13 = vector.load %arg8[%c0_10, %c0_11] : memref<8x32xf32, #tpu.memory_space<vmem>>, vector<8x32xf32>
      tpu.vector_store %arg8[%c0_10, %c0_11], %12 {strides = array<i32>} : memref<8x32xf32, #tpu.memory_space<vmem>>, vector<8x32xf32>,
    } else {
    }
    %c0 = arith.constant 0 : index
    %c0_1 = arith.constant 0 : index
    %c0_2 = arith.constant 0 : index
    %3 = vector.load %arg2[%c0, %c0_1, %c0_2] : memref<8x8x32xbf16, #tpu.memory_space<vmem>>, vector<8x8x32xbf16>
    %4 = arith.extf %3 : vector<8x8x32xbf16> to vector<8x8x32xf32>
    %c0_3 = arith.constant 0 : index
    %c0_4 = arith.constant 0 : index
    %5 = vector.load %arg8[%c0_3, %c0_4] : memref<8x32xf32, #tpu.memory_space<vmem>>, vector<8x32xf32>
    %cst = arith.constant dense<0.000000e+00> : vector<8x32xf32>
    %6 = vector.multi_reduction <add>, %4, %cst [1] : vector<8x8x32xf32> to vector<8x32xf32>
    %7 = arith.addf %5, %6 : vector<8x32xf32>
    %c0_5 = arith.constant 0 : index
    %c0_6 = arith.constant 0 : index
    %8 = vector.load %arg8[%c0_5, %c0_6] : memref<8x32xf32, #tpu.memory_space<vmem>>, vector<8x32xf32>
    tpu.vector_store %arg8[%c0_5, %c0_6], %7 {strides = array<i32>} : memref<8x32xf32, #tpu.memory_space<vmem>>, vector<8x32xf32>,
    %c0_i32_7 = arith.constant 0 : i32
    %9 = arith.cmpi eq, %arg1, %c0_i32_7 : i32
    %10 = arith.extui %9 : i1 to i32
    %c0_i32_8 = arith.constant 0 : i32
    %11 = arith.cmpi ne, %10, %c0_i32_8 : i32
    scf.if %11 {
      %c0_9 = arith.constant 0 : index
      %c0_10 = arith.constant 0 : index
      %12 = vector.load %arg8[%c0_9, %c0_10] : memref<8x32xf32, #tpu.memory_space<vmem>>, vector<8x32xf32>
      %cst_11 = arith.constant 1.250000e-01 : f32
      %13 = vector.broadcast %cst_11 : f32 to vector<8x32xf32>
      %14 = arith.mulf %12, %13 : vector<8x32xf32>
      %c0_12 = arith.constant 0 : index
      %c0_13 = arith.constant 0 : index
      %15 = vector.load %arg3[%c0_12, %c0_13] : memref<32x256xf32, #tpu.memory_space<vmem>>, vector<32x256xf32>
      %cst_14 = arith.constant dense<0.000000e+00> : vector<8x256xf32>
      %16 = tpu.matmul %14, %15, %cst_14 {dimension_numbers = #tpu.dot_dimension_numbers<[1], [0], [0], [1], [0, 0, 1, 1], [], []>} : vector<8x32xf32>, vector<32x256xf32>, vector<8x256xf32> -> vector<8x256xf32>
      %c0_15 = arith.constant 0 : index
      %c0_16 = arith.constant 0 : index
      %17 = vector.load %arg4[%c0_15, %c0_16] : memref<1x256xf32, #tpu.memory_space<vmem>>, vector<1x256xf32>
      %18 = vector.broadcast %17 : vector<1x256xf32> to vector<8x256xf32>
      %19 = arith.addf %16, %18 : vector<8x256xf32>
      %cst_17 = arith.constant 0.000000e+00 : f32
      %20 = vector.broadcast %cst_17 : f32 to vector<8x256xf32>
      %21 = arith.maximumf %19, %20 : vector<8x256xf32>
      %c0_18 = arith.constant 0 : index
      %c0_19 = arith.constant 0 : index
      %22 = vector.load %arg5[%c0_18, %c0_19] : memref<1x256xf32, #tpu.memory_space<vmem>>, vector<1x256xf32>
      %23 = vector.broadcast %22 : vector<1x256xf32> to vector<8x256xf32>
      %24 = arith.mulf %21, %23 : vector<8x256xf32>
      %cst_20 = arith.constant dense<0.000000e+00> : vector<8xf32>
      %25 = vector.multi_reduction <add>, %24, %cst_20 [1] : vector<8x256xf32> to vector<8xf32>
      %26 = vector.shape_cast %25 : vector<8xf32> to vector<8x1xf32>
      %c0_21 = arith.constant 0 : index
      %c0_22 = arith.constant 0 : index
      %27 = vector.load %arg6[%c0_21, %c0_22] : memref<1x1xf32, #tpu.memory_space<vmem>>, vector<1x1xf32>
      %28 = vector.broadcast %27 : vector<1x1xf32> to vector<8x1xf32>
      %29 = arith.addf %26, %28 : vector<8x1xf32>
      %30 = arith.negf %29 : vector<8x1xf32>
      %31 = math.exp %30 : vector<8x1xf32>
      %cst_23 = arith.constant 1.000000e+00 : f32
      %32 = vector.broadcast %cst_23 : f32 to vector<8x1xf32>
      %33 = arith.addf %32, %31 : vector<8x1xf32>
      %34 = arith.divf %32, %33 : vector<8x1xf32>
      %35 = vector.shape_cast %34 : vector<8x1xf32> to vector<8x1xf32>
      %36 = vector.broadcast %35 : vector<8x1xf32> to vector<8x128xf32>
      %c0_24 = arith.constant 0 : index
      %c0_25 = arith.constant 0 : index
      %37 = vector.load %arg7[%c0_24, %c0_25] : memref<8x128xf32, #tpu.memory_space<vmem>>, vector<8x128xf32>
      tpu.vector_store %arg7[%c0_24, %c0_25], %36 {strides = array<i32>} : memref<8x128xf32, #tpu.memory_space<vmem>>, vector<8x128xf32>,
    } else {
    }
    return
  }
  func.func @transform_0(%arg0: i32, %arg1: i32) -> (i32, i32, i32) {
    %c0_i32 = arith.constant 0 : i32
    %c0_i32_0 = arith.constant 0 : i32
    return %arg0, %arg1, %c0_i32 : i32, i32, i32
  }
  func.func @transform_1(%arg0: i32, %arg1: i32) -> (i32, i32) {
    %c0_i32 = arith.constant 0 : i32
    %c0_i32_0 = arith.constant 0 : i32
    %c0_i32_1 = arith.constant 0 : i32
    return %c0_i32, %c0_i32_0 : i32, i32
  }
  func.func @transform_2(%arg0: i32, %arg1: i32) -> (i32, i32) {
    %c0_i32 = arith.constant 0 : i32
    %c0_i32_0 = arith.constant 0 : i32
    %c0_i32_1 = arith.constant 0 : i32
    return %c0_i32, %c0_i32_0 : i32, i32
  }
  func.func @transform_3(%arg0: i32, %arg1: i32) -> (i32, i32) {
    %c0_i32 = arith.constant 0 : i32
    %c0_i32_0 = arith.constant 0 : i32
    %c0_i32_1 = arith.constant 0 : i32
    return %c0_i32, %c0_i32_0 : i32, i32
  }
  func.func @transform_4(%arg0: i32, %arg1: i32) -> (i32, i32) {
    %c0_i32 = arith.constant 0 : i32
    %c0_i32_0 = arith.constant 0 : i32
    %c0_i32_1 = arith.constant 0 : i32
    return %c0_i32, %c0_i32_0 : i32, i32
  }
  func.func @transform_5(%arg0: i32, %arg1: i32) -> (i32, i32) {
    %c0_i32 = arith.constant 0 : i32
    %c0_i32_0 = arith.constant 0 : i32
    return %arg0, %c0_i32 : i32, i32
  }
}

</mosaic_0001>

<bundles_post_ra>
// kernel: tpu_custom_call.1
= control target key start
LH: loop header
LB: loop body
LE: loop exit
PB: predicated region body
PF: predicated region fallthrough
CT: control target
= control target key end

     0   :  { %s483_s0 = inlined_call_operand.hbm [shape: bf16[8,8,32], index: 0, kind: input, shape index: {}]   ;;  %s484_s1 = inlined_call_operand.hbm [shape: f32[32,256], index: 1, kind: input, shape index: {}]   ;;  %s485_s2 = inlined_call_operand.vmem [shape: f32[1,256], index: 2, kind: input, shape index: {}]   ;;  %s486_s3 = inlined_call_operand.vmem [shape: f32[1,256], index: 3, kind: input, shape index: {}]   ;;  %s487_s4 = inlined_call_operand.<no memory space> [shape: f32[1,1], index: 4, kind: input, shape index: {}]   ;;  %s488_s5 = inlined_call_operand.hbm [shape: f32[8,128], index: 5, kind: output, shape index: {}]  }
   0x1   :  { %v10_v0 = vstv %s487_s4 }
   0x2   :  { %11 = vst [vmem:[#allocation3] sm:$0x1] %v10_v0 }
   0x3   :  { %12 = vsyncpa [#allocation5], 0 }
   0x4   :  { %13 = vsyncpa [#allocation8], 0 }
   0x5   :  { %14 = vsyncpa [#allocation6], 0  ;;  %s412_s20 = smov [#allocation4]  }
   0x6   :  { %s20_s21 = sshll.u32 %s412_s20, 4  ;;  %s21_s21 = int_to_ptr.vmem [resolvable:$true] %s20_s21 }
   0x7   :  { %s354_s22 = scalar_lea.vmem %s21_s21, 512  ;;  %p359_p1 = scmp.lt.s32.totalorder %s21_s21, %s21_s21 }
   0x8   :  { %p355_p0 = scmp.ne.s32.totalorder %s21_s21, %s354_s22  ;;  %p360_p2 = scmp.lt.s32.totalorder %s354_s22, %s354_s22 }
   0xa   :  { %p361_p3 = por %p360_p2, %p359_p1 }
   0xc   :  { %p362_p4 = pnand %p361_p3, %p355_p0 }
   0xe   :  { %365 = shalt.err (!%p362_p4)
}
   0xf   :  { %s413_s23 = smov 64   ;;  %s414_s24 = smov 4  }
  0x10   :  { %26 = dma.hbm_to_vmem [thread:$0]  %s483_s0, 512, %s21_s21, [#allocation5], %s413_s23, %s413_s23, %s414_s24  }
  0x11   :  { %s415_s4 = smov [#allocation7]  }
  0x12   :  { %s32_s27 = sshll.u32 %s415_s4, 4  ;;  %s33_s27 = int_to_ptr.vmem [resolvable:$true] %s32_s27 }
  0x13   :  { %s374_s28 = scalar_lea.vmem %s33_s27, 1024  ;;  %p379_p6 = scmp.lt.s32.totalorder %s33_s27, %s33_s27 }
  0x14   :  { %p375_p5 = scmp.ne.s32.totalorder %s33_s27, %s374_s28  ;;  %p380_p7 = scmp.lt.s32.totalorder %s374_s28, %s374_s28 }
  0x16   :  { %p381_p8 = por %p380_p7, %p379_p6 }
  0x18   :  { %p382_p9 = pnand %p381_p8, %p375_p5 }
  0x1a   :  { %385 = shalt.err (!%p382_p9)
}
  0x1b   :  { %s416_s29 = smov 256   ;;  %s417_s30 = smov 16  }
  0x1c   :  { %38 = dma.hbm_to_vmem [thread:$0]  %s484_s1, 1024, %s33_s27, [#allocation8], %s416_s29, %s416_s29, %s417_s30  }
  0x1d   :  { %406 = dma.done.wait [#allocation5], 512  }
  0x1e   :  { %407 = vsyncadd [#allocation5], 4294966784 }
  0x1f   :  { %408 = dma.done.wait [#allocation8], 1024  }
  0x20   :  { %409 = vsyncadd [#allocation8], 4294966272  ;;  %vm55_vm0 = vcmask 261120   ;;  %v418_v1 = vmov 0.0   ;;  %v168_v2 = vld [vmem:[#allocation7 + $0x38] sm:$0xff]  ;;  %v167_v3 = vld [vmem:[#allocation7 + $0x30] sm:$0xff] }
  0x21   :  { %56 = vst.msk [vmem:[#allocation2] sm:$0xff] %vm55_vm0, %v418_v1  ;;  %248 = vmatprep.mubr.f32.mxu0 %v418_v1  ;;  %v166_v4 = vld [vmem:[#allocation7 + $0x28] sm:$0xff]  ;;  %208 = vmatprep.subr.mxu0 %v168_v2  ;;  %v165_v5 = vld [vmem:[#allocation7 + $0x20] sm:$0xff]  ;;  %v164_v6 = vld [vmem:[#allocation7 + $0x18] sm:$0xff]  ;;  %vm139_vm1 = vcmask 1041409   ;;  %vm141_vm2 = vcmask 1042434  }
  0x22   :  { %209 = vmatpush1.msra.mxu0 %v167_v3  ;;  %v163_v7 = vld [vmem:[#allocation7 + $0x10] sm:$0xff]  ;;  %v314_v8 = vld [vmem:[#allocation4] sm:$0xff]   ;;  %v329_v11 = vld [vmem:[#allocation4 + $0x8] sm:$0xff]   ;;  %vm143_vm3 = vcmask 1043459   ;;  %vm145_vm4 = vcmask 1044484   ;;  %vm147_vm5 = vcmask 1045509  }
  0x23   :  { %210 = vmatprep.subr.mxu0 %v166_v4  ;;  %v315_v9 = vunpack.c.l.bf16 %v314_v8  ;;  %v316_v10 = vunpack.c.h.bf16 %v314_v8  ;;  %v330_v12 = vld [vmem:[#allocation4 + $0x10] sm:$0xff]   ;;  %v331_v13 = vld [vmem:[#allocation4 + $0x18] sm:$0xff]   ;;  %v162_v14 = vld [vmem:[#allocation7 + $0x8] sm:$0xff]  ;;  %v319_v15 = vunpack.c.l.bf16 %v329_v11  ;;  %v320_v16 = vunpack.c.h.bf16 %v329_v11 }
  0x24   :  { %211 = vmatpush1.msra.mxu0 %v165_v5  ;;  %v323_v17 = vunpack.c.l.bf16 %v330_v12  ;;  %v324_v18 = vunpack.c.h.bf16 %v330_v12  ;;  %v161_v19 = vld [vmem:[#allocation7] sm:$0xff]  ;;  %v327_v20 = vunpack.c.l.bf16 %v331_v13  ;;  %v328_v21 = vunpack.c.h.bf16 %v331_v13 }
  0x25   :  { %212 = vmatprep.subr.mxu0 %v164_v6  ;;  %v75_v22 = vsel %vm55_vm0, %v315_v9, 0.0  ;;  %v82_v23 = vsel %vm55_vm0, %v316_v10, 0.0  ;;  %v89_v26 = vsel %vm55_vm0, %v319_v15, 0.0  ;;  %v96_v27 = vsel %vm55_vm0, %v320_v16, 0.0 }
  0x26   :  { %213 = vmatpush1.msra.mxu0 %v163_v7  ;;  %v76_v24 = vrot.slane %v75_v22, 4  ;;  %v83_v25 = vrot.slane %v82_v23, 4  ;;  %v90_v28 = vrot.slane %v89_v26, 4  ;;  %v97_v29 = vrot.slane %v96_v27, 4 }
  0x27   :  { %214 = vmatprep.subr.mxu0 %v162_v14  ;;  %v103_v30 = vsel %vm55_vm0, %v323_v17, 0.0  ;;  %v110_v31 = vsel %vm55_vm0, %v324_v18, 0.0  ;;  %v117_v38 = vsel %vm55_vm0, %v327_v20, 0.0  ;;  %v124_v39 = vsel %vm55_vm0, %v328_v21, 0.0 }
  0x28   :  { %215 = vmatpush1.msra.mxu0 %v161_v19  ;;  %v77_v32 = vadd.f32 %v76_v24, %v75_v22  ;;  %v84_v33 = vadd.f32 %v83_v25, %v82_v23  ;;  %v104_v34 = vrot.slane %v103_v30, 4  ;;  %v111_v35 = vrot.slane %v110_v31, 4  ;;  %v73_v18 = vld [vmem:[#allocation2] sm:$0xff] }
  0x29   :  { %v91_v36 = vadd.f32 %v90_v28, %v89_v26  ;;  %v98_v37 = vadd.f32 %v97_v29, %v96_v27  ;;  %v118_v46 = vrot.slane %v117_v38, 4  ;;  %v125_v47 = vrot.slane %v124_v39, 4  ;;  %v169_v28 = vld [vmem:[%s485_s2] sm:$0x3]  ;;  %s420_s2 = smov [#allocation9]  }
  0x2a   :  { %v78_v40 = vrot.slane %v77_v32, 2  ;;  %v85_v41 = vrot.slane %v84_v33, 2  ;;  %v105_v42 = vadd.f32 %v104_v34, %v103_v30  ;;  %v112_v43 = vadd.f32 %v111_v35, %v110_v31 }
  0x2b   :  { %v92_v44 = vrot.slane %v91_v36, 2  ;;  %v99_v45 = vrot.slane %v98_v37, 2  ;;  %v119_v54 = vadd.f32 %v118_v46, %v117_v38  ;;  %v126_v55 = vadd.f32 %v125_v47, %v124_v39 }
  0x2c   :  { %v79_v48 = vadd.f32 %v78_v40, %v77_v32  ;;  %v86_v49 = vadd.f32 %v85_v41, %v84_v33  ;;  %v106_v50 = vrot.slane %v105_v42, 2  ;;  %v113_v51 = vrot.slane %v112_v43, 2  ;;  %v257_v33 = vld [vmem:[%s486_s3] sm:$0x3]  ;;  %s300_s3 = sshll.u32 %s420_s2, 4  ;;  %s301_s3 = int_to_ptr.vmem [resolvable:$true] %s300_s3 }
  0x2d   :  { %v93_v52 = vadd.f32 %v92_v44, %v91_v36  ;;  %v100_v53 = vadd.f32 %v99_v45, %v98_v37  ;;  %v120_v62 = vrot.slane %v119_v54, 2  ;;  %v127_v63 = vrot.slane %v126_v55, 2  ;;  %v311_v45 = vld [vmem:[#allocation3] ss:$0 sm:$0xff]  ;;  %s386_s10 = scalar_lea.vmem %s301_s3, 128  ;;  %p391_p11 = scmp.lt.s32.totalorder %s301_s3, %s301_s3 }
  0x2e   :  { %v80_v56 = vrot.slane %v79_v48, 1  ;;  %v87_v57 = vrot.slane %v86_v49, 1  ;;  %v107_v58 = vadd.f32 %v106_v50, %v105_v42  ;;  %v114_v59 = vadd.f32 %v113_v51, %v112_v43  ;;  %p387_p10 = scmp.ne.s32.totalorder %s301_s3, %s386_s10  ;;  %p392_p12 = scmp.lt.s32.totalorder %s386_s10, %s386_s10 }
  0x2f   :  { %v94_v60 = vrot.slane %v93_v52, 1  ;;  %v101_v61 = vrot.slane %v100_v53, 1  ;;  %v121_v6 = vadd.f32 %v120_v62, %v119_v54  ;;  %v128_v7 = vadd.f32 %v127_v63, %v126_v55 }
  0x30   :  { %v81_v0 = vadd.f32 %v80_v56, %v79_v48  ;;  %v88_v1 = vadd.f32 %v87_v57, %v86_v49  ;;  %v108_v2 = vrot.slane %v107_v58, 1  ;;  %v115_v3 = vrot.slane %v114_v59, 1  ;;  %p393_p13 = por %p392_p12, %p391_p11 }
  0x31   :  { %v95_v4 = vadd.f32 %v94_v60, %v93_v52  ;;  %v102_v5 = vadd.f32 %v101_v61, %v100_v53  ;;  %v122_v11 = vrot.slane %v121_v6, 1  ;;  %v129_v12 = vrot.slane %v128_v7, 1 }
  0x32   :  { %v109_v8 = vadd.f32 %v108_v2, %v107_v58  ;;  %v116_v9 = vadd.f32 %v115_v3, %v114_v59  ;;  %v140_v10 = vsel %vm139_vm1, %v88_v1, %v81_v0  ;;  %vm149_vm6 = vcmask 1046534   ;;  %p394_p0 = pnand %p393_p13, %p387_p10 }
  0x33   :  { %v142_v13 = vsel %vm141_vm2, %v95_v4, %v140_v10  ;;  %v123_v15 = vadd.f32 %v122_v11, %v121_v6  ;;  %v130_v16 = vadd.f32 %v129_v12, %v128_v7  ;;  %vm151_vm7 = vcmask 1047559  }
  0x34   :  { %v144_v14 = vsel %vm143_vm3, %v102_v5, %v142_v13  ;;  %v171_v25 = vlaneseq  ;;  %v419_v44 = vmov 0  }
  0x35   :  { %v146_v17 = vsel %vm145_vm4, %v109_v8, %v144_v14  ;;  %341 = vset.pattern.permute.xlu0 %v419_v44 }
  0x36   :  { %v148_v19 = vsel %vm147_vm5, %v116_v9, %v146_v17  ;;  %v172_v26 = vshrl.u32 %v171_v25, 7 }
  0x37   :  { %v150_v20 = vsel %vm149_vm6, %v123_v15, %v148_v19 }
  0x38   :  { %v152_v21 = vsel %vm151_vm7, %v130_v16, %v150_v20  ;;  %v173_v27 = vsub.s32 0, %v172_v26  ;;  %v177_v29 = vsub.s32 1, %v172_v26 }
  0x39   :  { %v154_v22 = vadd.f32 %v152_v21, %v73_v18 }
  0x3a   :  { %v174_v30 = vrot.slane %v169_v28, %v173_v27  ;;  %v178_v31 = vrot.slane %v169_v28, %v177_v29  ;;  %v262_v38 = vrot.slane %v257_v33, %v173_v27  ;;  %v266_v39 = vrot.slane %v257_v33, %v177_v29 }
  0x3b   :  { %155 = vst.msk [vmem:[#allocation2] sm:$0xff] %vm55_vm0, %v154_v22 }
  0x42   :  { %v159_v23 = vld [vmem:[#allocation2] sm:$0xff] }
  0x43   :  { %v160_v24 = vmul.f32 0.125, %v159_v23 }
  0x45   :  { %310 = vmatmul.mubr.msk.f32.vlgmr.msra.gmra.mxu0 %vm55_vm0, %v160_v24 }
 0x105   :  { %v250_v32 = vpop.f32.mrf.mxu0 }
 0x106   :  { %v251_v34 = vadd.f32 %v250_v32, %v174_v30 }
 0x107   :  { %v252_v35 = vpop.f32.mrf.mxu0 }
 0x108   :  { %v255_v36 = vmax.f32 %v251_v34, 0.0  ;;  %v253_v37 = vadd.f32 %v252_v35, %v178_v31 }
 0x10a   :  { %v256_v40 = vmax.f32 %v253_v37, 0.0  ;;  %v269_v41 = vmul.f32 %v262_v38, %v255_v36 }
 0x10c   :  { %v270_v42 = vmul.f32 %v266_v39, %v256_v40 }
 0x10e   :  { %v271_v43 = vadd.f32 %v270_v42, %v269_v41 }
 0x110   :  { %272 = vadd.xlane.f32.xlu0 %v271_v43 }
 0x199   :  { %v273_v46 = vpop.xlane.xlu0 %272 }
 0x19a   :  { %v281_v47 = vadd.f32 %v311_v45, %v273_v46 }
 0x19c   :  { %v312_v48 = vmul.f32 -1.442695, %v281_v47 }
 0x19e   :  { %342 = vpow2.f32 %v312_v48 }
 0x1ab   :  { %v343_v49 = vpop.eup %342 }
 0x1ac   :  { %v285_v50 = vadd.f32 1.0, %v343_v49 }
 0x1ae   :  { %344 = vrcp.f32 %v285_v50 }
 0x1bb   :  { %v345_v51 = vpop.eup %344 }
 0x1bc   :  { %290 = vperm.xlu0 %341, %v345_v51  }
 0x237   :  { %v291_v52 = vpop.permute.xlu0 %290 }
 0x238   :  { %293 = vst [vmem:[#allocation9] sm:$0xff] %v291_v52 }
 0x239   :  { %397 = shalt.err (!%p394_p0)
}
 0x23a   :  { %303 = dma.vmem_to_hbm [thread:$0]  %s301_s3, 128, %s488_s5, [#allocation6]  }
 0x23b   :  { %410 = dma.done.wait [#allocation6], 128  }
 0x23c   :  { %411 = vsyncadd [#allocation6], 4294967168 }
 0x23d   :  { %307 = vsyncpa [#allocation5], 1 }
 0x23e   :  { %308 = vsyncpa [#allocation8], 1 }
 0x23f   :  { %309 = vsyncpa [#allocation6], 1 }

</bundles_post_ra>
